<compile_context>
chip_gen: v5e
topology: v5e:2x2
jax: 0.10.0
libtpu: 0.0.40
codegen_flags: <defaults>
</compile_context>

<pallas_src>
import math

import jax
import jax.numpy as jnp
from jax.experimental import pallas as pl
from jax.experimental.pallas import tpu as pltpu


def _round_up(n: int, m: int) -> int:
    return ((n + m - 1) // m) * m


def _composition_kernel(x_ref, w_ref, o_ref):
    # Hot path: (TM, HW) @ (HW, Ep) on the MXU, f32 operands, f32 accumulation.
    # The kernel is memory-bound, so the extra MXU passes for f32 are free.
    o_ref[...] = jnp.dot(
        x_ref[...], w_ref[...], preferred_element_type=jnp.float32
    )


def make_composition_basis(embedding_dim: int, height: int, width: int) -> jnp.ndarray:
    """Exact (H*W, embedding_dim) f32 rotation basis matching the PyTorch module."""
    assert embedding_dim % 2 == 0, "Embedding dimension must be even"
    d2 = embedding_dim // 2
    # torch.range(1, D2) == [1, 2, ..., D2] (inclusive); BOTH thetas divided by W
    # (faithful to the original module, even for H != W).
    k = jnp.arange(1, d2 + 1, dtype=jnp.float32)
    theta_x = 2.0 * math.pi * k / width
    theta_y = 2.0 * math.pi * k / width
    ii, jj = jnp.meshgrid(
        jnp.arange(height, dtype=jnp.float32),
        jnp.arange(width, dtype=jnp.float32),
        indexing="ij",
    )
    i_grid = ii.reshape(-1)  # (H*W,)
    j_grid = jj.reshape(-1)  # (H*W,)
    theta = i_grid[:, None] * theta_x[None, :] + j_grid[:, None] * theta_y[None, :]
    cos_t = jnp.cos(theta)  # (H*W, D2)
    sin_t = jnp.sin(theta)  # (H*W, D2)
    # Interleave: column 2k = cos, column 2k+1 = -sin  (matches
    # torch.stack([x_rot, y_rot], -1).reshape(B, E) with y_comp == 0).
    basis = jnp.stack([cos_t, -sin_t], axis=-1).reshape(height * width, embedding_dim)
    return basis.astype(jnp.float32)


def init_composition_basis(embedding_dim: int, height: int, width: int) -> jnp.ndarray:
    """Build the (H*W, e_pad) f32 basis ONCE (module-init time, not per forward).

    Only the embedding axis is padded (to a multiple of 128, zero columns) so the
    output store is lane-dense and unmasked; K = H*W is NOT padded in HBM.
    """
    e_pad = _round_up(embedding_dim, 128)
    basis = make_composition_basis(embedding_dim, height, width)
    return jnp.pad(basis, ((0, 0), (0, e_pad - embedding_dim)))


def _pick_tm(b8: int, hw: int, e_pad: int, budget_bytes: int) -> int:
    """Batch-tile size: as large as the VMEM budget allows, multiple of 8,
    capped at 4096, never larger than the (8-rounded) batch, and kept to
    >= 2 grid steps when there is enough work (v7x megacore + pipelining)."""
    bytes_per_row = 2 * 4 * (hw + e_pad)  # double-buffered f32 x tile + out tile
    tm = budget_bytes // bytes_per_row
    tm = max(8, min(4096, (tm // 8) * 8))
    tm = min(tm, b8)
    if b8 >= 16:
        tm = min(tm, _round_up(pl.cdiv(b8, 2), 8))
    return tm


def composition_layer(
    x: jnp.ndarray,
    basis_padded: jnp.ndarray,
    embedding_dim: int,
    *,
    tm: int | None = None,
    vmem_tile_budget_bytes: int = 24 << 20,
) -> jnp.ndarray:
    """x: (B, 1, H, W) f32  ->  (B, embedding_dim) f32.

    `basis_padded` comes from init_composition_basis (hoisted out of the forward).
    """
    B, C, H, W = x.shape
    assert C == 1, "CompositionLayer requires a single input channel"
    hw = H * W
    hw_b, e_pad = basis_padded.shape
    assert hw_b == hw and e_pad >= embedding_dim and e_pad % 128 == 0

    # Only pad B to a sublane multiple (<= 7 extra rows); ragged trailing tiles
    # are handled by the grid, so we never pad a whole extra tile.
    b8 = _round_up(max(B, 8), 8)
    if tm is None:
        tm = _pick_tm(b8, hw, e_pad, vmem_tile_budget_bytes)
    grid = (pl.cdiv(b8, tm),)

    x_flat = x.reshape(B, hw)  # free view of the contiguous (B,1,H,W) input
    if b8 != B:
        x_flat = jnp.pad(x_flat, ((0, b8 - B), (0, 0)))

    # Double-buffered x + out tiles, double-buffered (grid-invariant) basis,
    # plus headroom for compiler-internal scratch.
    vmem_bytes = 2 * tm * (hw + e_pad) * 4 + 2 * hw * e_pad * 4 + (2 << 20)
    vmem_bytes = max(int(vmem_bytes), 16 << 20)

    cost = pl.CostEstimate(
        flops=2 * b8 * hw * e_pad,
        transcendentals=0,
        bytes_accessed=4 * (b8 * hw + hw * e_pad + b8 * e_pad),
    )

    out = pl.pallas_call(
        _composition_kernel,
        out_shape=jax.ShapeDtypeStruct((b8, e_pad), jnp.float32),
        grid=grid,
        in_specs=[
            # x: tiled along batch -> double-buffered DMA overlaps the MXU.
            # Last dim == full array dim, so no 128-divisibility requirement.
            pl.BlockSpec((tm, hw), lambda i: (i, 0)),
            # basis: grid-invariant block, stays resident in VMEM.
            pl.BlockSpec((hw, e_pad), lambda i: (0, 0)),
        ],
        out_specs=pl.BlockSpec((tm, e_pad), lambda i: (i, 0)),
        compiler_params=pltpu.CompilerParams(
            dimension_semantics=("parallel",),  # shards across the 2 TCs on v7x
            vmem_limit_bytes=vmem_bytes,
        ),
        cost_estimate=cost,
    )(x_flat, basis_padded)

    # Drop-in semantics: return (B, embedding_dim). A fused consumer could take
    # the padded (b8, e_pad) buffer directly and skip this slice.
    return out[:B, :embedding_dim]


def composition_layer_ref(x: jnp.ndarray, embedding_dim: int) -> jnp.ndarray:
    """Pure-JAX f32 reference mirroring the PyTorch forward exactly."""
    B, C, H, W = x.shape
    basis = make_composition_basis(embedding_dim, H, W)
    return x.reshape(B, H * W).astype(jnp.float32) @ basis


if __name__ == "__main__":
    # Small shapes consistent with the module: B=2, C=1, H=W=16, embedding_dim=32
    B, H, W = 2, 16, 16
    embedding_dim = 32

    key = jax.random.PRNGKey(0)
    x = jax.random.normal(key, (B, 1, H, W), dtype=jnp.float32)

    # Basis is a fixed parameter: build it once (module init), reuse every forward.
    basis_padded = init_composition_basis(embedding_dim, H, W)

    out = composition_layer(x, basis_padded, embedding_dim)
    out = jax.block_until_ready(out)
    assert out.shape == (B, embedding_dim)

    # Check vs the f32 PyTorch-equivalent reference. Tolerance covers the worst
    # case of MXU default-precision (bf16-pass) accumulation.
    ref = composition_layer_ref(x, embedding_dim)
    assert jnp.allclose(out, ref, atol=0.5, rtol=5e-2), "mismatch vs f32 reference"

    # Second check: batch not a multiple of 8 / of the tile -> exercises the
    # small sublane pad + ragged trailing grid block + multi-step parallel grid.
    B2 = 20
    x2 = jax.random.normal(jax.random.PRNGKey(1), (B2, 1, H, W), dtype=jnp.float32)
    out2 = jax.block_until_ready(
        composition_layer(x2, basis_padded, embedding_dim, tm=16)
    )
    assert out2.shape == (B2, embedding_dim)
    ref2 = composition_layer_ref(x2, embedding_dim)
    assert jnp.allclose(out2, ref2, atol=0.5, rtol=5e-2), "mismatch on ragged batch"

    print("KERNEL_OK")
</pallas_src>

<mosaic_0001>
module attributes {stable_mosaic.version = 11 : i64} {
  func.func @_composition_kernel(%arg0: i32, %arg1: memref<8x256xf32, #tpu.memory_space<vmem>>, %arg2: memref<256x128xf32, #tpu.memory_space<vmem>>, %arg3: memref<8x128xf32, #tpu.memory_space<vmem>>) attributes {dimension_semantics = [#tpu.dimension_semantics<parallel>], iteration_bounds = array<i64: 1>, scalar_prefetch = 0 : i64, scratch_operands = 0 : i64, tpu.core_type = #tpu.core_type<tc>, window_params = [{transform_indices = @transform_0, window_bounds = array<i64: 8, 256>}, {pipeline_mode = #tpu.pipeline_mode<synchronous>, transform_indices = @transform_1, window_bounds = array<i64: 256, 128>}, {transform_indices = @transform_2, window_bounds = array<i64: 8, 128>}]} {
    %c0 = arith.constant 0 : index
    %c0_0 = arith.constant 0 : index
    %0 = vector.load %arg1[%c0, %c0_0] : memref<8x256xf32, #tpu.memory_space<vmem>>, vector<8x256xf32>
    %c0_1 = arith.constant 0 : index
    %c0_2 = arith.constant 0 : index
    %1 = vector.load %arg2[%c0_1, %c0_2] : memref<256x128xf32, #tpu.memory_space<vmem>>, vector<256x128xf32>
    %cst = arith.constant dense<0.000000e+00> : vector<8x128xf32>
    %2 = tpu.matmul %0, %1, %cst {dimension_numbers = #tpu.dot_dimension_numbers<[1], [0], [0], [1], [0, 0, 1, 1], [], []>} : vector<8x256xf32>, vector<256x128xf32>, vector<8x128xf32> -> vector<8x128xf32>
    %c0_3 = arith.constant 0 : index
    %c0_4 = arith.constant 0 : index
    %3 = vector.load %arg3[%c0_3, %c0_4] : memref<8x128xf32, #tpu.memory_space<vmem>>, vector<8x128xf32>
    tpu.vector_store %arg3[%c0_3, %c0_4], %2 {strides = array<i32>} : memref<8x128xf32, #tpu.memory_space<vmem>>, vector<8x128xf32>,
    return
  }
  func.func @transform_0(%arg0: i32) -> (i32, i32) {
    %c0_i32 = arith.constant 0 : i32
    %c0_i32_0 = arith.constant 0 : i32
    return %arg0, %c0_i32 : i32, i32
  }
  func.func @transform_1(%arg0: i32) -> (i32, i32) {
    %c0_i32 = arith.constant 0 : i32
    %c0_i32_0 = arith.constant 0 : i32
    %c0_i32_1 = arith.constant 0 : i32
    return %c0_i32, %c0_i32_0 : i32, i32
  }
  func.func @transform_2(%arg0: i32) -> (i32, i32) {
    %c0_i32 = arith.constant 0 : i32
    %c0_i32_0 = arith.constant 0 : i32
    return %arg0, %c0_i32 : i32, i32
  }
}

</mosaic_0001>

<bundles_post_ra>
// kernel: tpu_custom_call.1
= control target key start
LH: loop header
LB: loop body
LE: loop exit
PB: predicated region body
PF: predicated region fallthrough
CT: control target
= control target key end

     0   :  { %7 = vsyncpa [#allocation3], 0  ;;  %s247_s0 = inlined_call_operand.hbm [shape: f32[8,256], index: 0, kind: input, shape index: {}]   ;;  %s248_s1 = inlined_call_operand.hbm [shape: f32[256,128], index: 1, kind: input, shape index: {}]   ;;  %s249_s2 = inlined_call_operand.hbm [shape: f32[8,128], index: 2, kind: output, shape index: {}]  }
   0x1   :  { %8 = vsyncpa [#allocation6], 0 }
   0x2   :  { %9 = vsyncpa [#allocation4], 0  ;;  %s15_s11 = sshll.u32 %s247_s0, 4  ;;  %s218_s12 = smov [#allocation2]   ;;  %s16_s11 = int_to_ptr.hbm [resolvable:$true] %s15_s11 }
   0x3   :  { %s17_s13 = sshll.u32 %s218_s12, 4  ;;  %s25_s16 = sshll.u32 %s248_s1, 4  ;;  %s18_s13 = int_to_ptr.vmem [resolvable:$true] %s17_s13  ;;  %s26_s16 = int_to_ptr.hbm [resolvable:$true] %s25_s16 }
   0x4   :  { %20 = dma.hbm_to_vmem [thread:$0]  %s16_s11, 256, %s18_s13, [#allocation3]  }
   0x5   :  { %s219_s17 = smov [#allocation5]   ;;  %s220_s19 = smov 128  }
   0x6   :  { %s27_s18 = sshll.u32 %s219_s17, 4  ;;  %s221_s20 = smov 8   ;;  %s28_s18 = int_to_ptr.vmem [resolvable:$true] %s27_s18 }
   0x7   :  { %33 = dma.hbm_to_vmem [thread:$0]  %s26_s16, 4096, %s28_s18, [#allocation6], %s220_s19, %s220_s19, %s221_s20  }
   0x8   :  { %212 = dma.done.wait [#allocation3], 256  }
   0x9   :  { %213 = vsyncadd [#allocation3], 4294967040 }
   0xa   :  { %214 = dma.done.wait [#allocation6], 4096  }
   0xb   :  { %215 = vsyncadd [#allocation6], 4294963200  ;;  %v59_v0 = vld [vmem:[#allocation5 + $0x78] sm:$0xff]  ;;  %v58_v2 = vld [vmem:[#allocation5 + $0x70] sm:$0xff]  ;;  %s222_s0 = smov [#allocation7]   ;;  %s124_s23 = sshll.u32 %s249_s2, 4  ;;  %s125_s23 = int_to_ptr.hbm [resolvable:$true] %s124_s23 }
   0xc   :  { %v75_v1 = vld [vmem:[#allocation5 + $0xf8] sm:$0xff]  ;;  %76 = vmatpush.msra.mxu0 %v59_v0  ;;  %v74_v3 = vld [vmem:[#allocation5 + $0xf0] sm:$0xff]  ;;  %v57_v4 = vld [vmem:[#allocation5 + $0x68] sm:$0xff]  ;;  %s122_s1 = sshll.u32 %s222_s0, 4  ;;  %s123_s1 = int_to_ptr.vmem [resolvable:$true] %s122_s1 }
   0xd   :  { %96 = vmatpush.msra.mxu1 %v75_v1  ;;  %v73_v5 = vld [vmem:[#allocation5 + $0xe8] sm:$0xff]  ;;  %v56_v6 = vld [vmem:[#allocation5 + $0x60] sm:$0xff]  ;;  %v55_v8 = vld [vmem:[#allocation5 + $0x58] sm:$0xff] }
   0xe   :  { %77 = vmatpush.msra.mxu0 %v58_v2  ;;  %v72_v7 = vld [vmem:[#allocation5 + $0xe0] sm:$0xff]  ;;  %v71_v9 = vld [vmem:[#allocation5 + $0xd8] sm:$0xff]  ;;  %v54_v10 = vld [vmem:[#allocation5 + $0x50] sm:$0xff] }
   0xf   :  { %97 = vmatpush.msra.mxu1 %v74_v3  ;;  %v70_v11 = vld [vmem:[#allocation5 + $0xd0] sm:$0xff]  ;;  %v53_v12 = vld [vmem:[#allocation5 + $0x48] sm:$0xff]  ;;  %v52_v14 = vld [vmem:[#allocation5 + $0x40] sm:$0xff] }
  0x10   :  { %78 = vmatpush.msra.mxu0 %v57_v4  ;;  %v69_v13 = vld [vmem:[#allocation5 + $0xc8] sm:$0xff]  ;;  %v68_v15 = vld [vmem:[#allocation5 + $0xc0] sm:$0xff]  ;;  %v51_v16 = vld [vmem:[#allocation5 + $0x38] sm:$0xff] }
  0x11   :  { %98 = vmatpush.msra.mxu1 %v73_v5  ;;  %v67_v17 = vld [vmem:[#allocation5 + $0xb8] sm:$0xff]  ;;  %v50_v18 = vld [vmem:[#allocation5 + $0x30] sm:$0xff]  ;;  %v49_v20 = vld [vmem:[#allocation5 + $0x28] sm:$0xff] }
  0x12   :  { %79 = vmatpush.msra.mxu0 %v56_v6  ;;  %v66_v19 = vld [vmem:[#allocation5 + $0xb0] sm:$0xff]  ;;  %v65_v21 = vld [vmem:[#allocation5 + $0xa8] sm:$0xff]  ;;  %v48_v22 = vld [vmem:[#allocation5 + $0x20] sm:$0xff] }
  0x13   :  { %99 = vmatpush.msra.mxu1 %v72_v7  ;;  %v64_v23 = vld [vmem:[#allocation5 + $0xa0] sm:$0xff]  ;;  %v47_v24 = vld [vmem:[#allocation5 + $0x18] sm:$0xff]  ;;  %v46_v26 = vld [vmem:[#allocation5 + $0x10] sm:$0xff] }
  0x14   :  { %80 = vmatpush.msra.mxu0 %v55_v8  ;;  %v63_v25 = vld [vmem:[#allocation5 + $0x98] sm:$0xff]  ;;  %v62_v27 = vld [vmem:[#allocation5 + $0x90] sm:$0xff]  ;;  %v45_v28 = vld [vmem:[#allocation5 + $0x8] sm:$0xff] }
  0x15   :  { %100 = vmatpush.msra.mxu1 %v71_v9  ;;  %v61_v29 = vld [vmem:[#allocation5 + $0x88] sm:$0xff]  ;;  %v44_v30 = vld [vmem:[#allocation5] sm:$0xff]  ;;  %v42_v32 = vld [vmem:[#allocation2] sm:$0xff] }
  0x16   :  { %81 = vmatpush.msra.mxu0 %v54_v10  ;;  %v60_v31 = vld [vmem:[#allocation5 + $0x80] sm:$0xff]  ;;  %v43_v33 = vld [vmem:[#allocation2 + $0x8] sm:$0xff] }
  0x17   :  { %101 = vmatpush.msra.mxu1 %v70_v11 }
  0x18   :  { %82 = vmatpush.msra.mxu0 %v53_v12 }
  0x19   :  { %102 = vmatpush.msra.mxu1 %v69_v13 }
  0x1a   :  { %83 = vmatpush.msra.mxu0 %v52_v14 }
  0x1b   :  { %103 = vmatpush.msra.mxu1 %v68_v15 }
  0x1c   :  { %84 = vmatpush.msra.mxu0 %v51_v16 }
  0x1d   :  { %104 = vmatpush.msra.mxu1 %v67_v17 }
  0x1e   :  { %85 = vmatpush.msra.mxu0 %v50_v18 }
  0x1f   :  { %105 = vmatpush.msra.mxu1 %v66_v19 }
  0x20   :  { %86 = vmatpush.msra.mxu0 %v49_v20 }
  0x21   :  { %106 = vmatpush.msra.mxu1 %v65_v21 }
  0x22   :  { %87 = vmatpush.msra.mxu0 %v48_v22 }
  0x23   :  { %107 = vmatpush.msra.mxu1 %v64_v23 }
  0x24   :  { %88 = vmatpush.msra.mxu0 %v47_v24 }
  0x25   :  { %108 = vmatpush.msra.mxu1 %v63_v25 }
  0x26   :  { %89 = vmatpush.msra.mxu0 %v46_v26 }
  0x27   :  { %109 = vmatpush.msra.mxu1 %v62_v27 }
  0x28   :  { %90 = vmatpush.msra.mxu0 %v45_v28 }
  0x29   :  { %110 = vmatpush.msra.mxu1 %v61_v29 }
  0x2a   :  { %91 = vmatpush.msra.mxu0 %v44_v30 }
  0x2b   :  { %111 = vmatpush.msra.mxu1 %v60_v31  ;;  %92 = vmatmul.f32.vlgmr.msra.gmra.mxu0 %v42_v32 }
  0x2c   :  { %112 = vmatmul.f32.vlgmr.msra.gmra.mxu1 %v43_v33 }
  0xa8   :  { %v93_v34 = vpop.f32.mrf.mxu0 }
  0xa9   :  { %v113_v35 = vpop.f32.mrf.mxu1 }
  0xaa   :  { %v114_v36 = vadd.f32 %v113_v35, %v93_v34 }
  0xac   :  { %116 = vst [vmem:[#allocation7] sm:$0xff] %v114_v36 }
  0xad   :  { %127 = dma.vmem_to_hbm [thread:$0]  %s123_s1, 128, %s125_s23, [#allocation4]  }
  0xae   :  { %216 = dma.done.wait [#allocation4], 128  }
  0xaf   :  { %217 = vsyncadd [#allocation4], 4294967168 }
  0xb0   :  { %132 = vsyncpa [#allocation3], 1 }
  0xb1   :  { %133 = vsyncpa [#allocation6], 1 }
  0xb2   :  { %134 = vsyncpa [#allocation4], 1 }

</bundles_post_ra>
